<compile_context>
chip_gen: v5e
topology: v5e:2x2
jax: 0.10.0
libtpu: 0.0.40
codegen_flags: <defaults>
</compile_context>

<pallas_src>
import numpy as np
import jax
import jax.numpy as jnp
from jax import lax
from jax.experimental import pallas as pl
from jax.experimental.pallas import tpu as pltpu


# ----------------------------------------------------------------------------
# Pallas kernel: fused bidirectional LSTM + max over time
# ----------------------------------------------------------------------------
def _bilstm_max_kernel(x_ref, wx_ref, b_ref, whh_ref, out_ref):
    T, B, E2 = x_ref.shape            # E2 = 2E ([x_t | x_{T-1-t}])
    H2 = out_ref.shape[1]             # 2H  (fused [fwd | bwd] hidden)
    G = 4 * H2                        # 8H  fused gate width (=128 at test sizes)

    # ---- hoisted input projection: one matmul over ALL timesteps, both dirs.
    # Backward time reversal + bias fold are already baked in wrapper-side, so
    # g_all[t] is directly the fused, time-aligned gate pre-activation tile.
    x_all = x_ref[...].reshape(T * B, E2)
    g_all = (jnp.dot(x_all, wx_ref[...], preferred_element_type=jnp.float32)
             + b_ref[...]).reshape(T, B, G)

    whh = whh_ref[...]                # (2H, 8H) block-diagonal, interleaved cols

    h = jnp.zeros((B, H2), jnp.float32)
    c = jnp.zeros((B, H2), jnp.float32)
    mx = jnp.full((B, H2), -jnp.inf, jnp.float32)   # every step's h joins the max

    # Fully static (unrolled) recurrence: state and gate pre-acts live in vregs.
    # NOTE: the recurrent dot could be replaced by an unrolled VPU broadcast-MAC
    # over K=2H to dodge MXU result-FIFO latency; kept on the MXU pending benchmark.
    for t in range(T):
        gates = g_all[t] + jnp.dot(h, whh, preferred_element_type=jnp.float32)
        sig = jax.nn.sigmoid(gates[:, :3 * H2])   # [i | f | o], both directions
        g_g = jnp.tanh(gates[:, 3 * H2:])         # [g], both directions
        i_g = sig[:, :H2]
        f_g = sig[:, H2:2 * H2]
        o_g = sig[:, 2 * H2:]
        c = f_g * c + i_g * g_g
        h = o_g * jnp.tanh(c)
        mx = jnp.maximum(mx, h)

    # (B, 2H) = [max_t h_fwd | max_t h_bwd] -- already the module's output layout.
    out_ref[...] = mx


def bilstm_max_pallas(x_btE, params):
    """x_btE: (B, T, E) float32 embedded sequences. Returns (B, 2H) float32."""
    B, T, E = x_btE.shape
    H = params["w_hh_f"].shape[1]     # w_hh_f: (4H, H)
    H2 = 2 * H
    G4 = 4 * H

    # Column permutation: source layout [fwd 4H | bwd 4H], each direction in
    # PyTorch gate order [i, f, g, o]  ->  target interleaved layout
    # [i_f, i_b, f_f, f_b, o_f, o_b, g_f, g_b] (each block H wide).
    def col(dir_idx, pt_gate_idx):
        return np.arange(pt_gate_idx * H, (pt_gate_idx + 1) * H) + dir_idx * G4

    perm = np.concatenate([
        col(0, 0), col(1, 0),   # i_f, i_b
        col(0, 1), col(1, 1),   # f_f, f_b
        col(0, 3), col(1, 3),   # o_f, o_b
        col(0, 2), col(1, 2),   # g_f, g_b
    ])

    f32 = jnp.float32
    wih_f_t = jnp.transpose(params["w_ih_f"]).astype(f32)   # (E, 4H)
    wih_b_t = jnp.transpose(params["w_ih_b"]).astype(f32)
    whh_f_t = jnp.transpose(params["w_hh_f"]).astype(f32)   # (H, 4H)
    whh_b_t = jnp.transpose(params["w_hh_b"]).astype(f32)

    # Block-structured input-projection weight: rows 0:E feed forward gates from
    # x[t], rows E:2E feed backward gates from x[T-1-t] (see x_dup below).
    wx_src = jnp.zeros((2 * E, 2 * G4), f32)
    wx_src = wx_src.at[:E, :G4].set(wih_f_t)
    wx_src = wx_src.at[E:, G4:].set(wih_b_t)

    # Block-diagonal recurrent weight: h layout is [h_fwd | h_bwd] along 2H.
    whh_src = jnp.zeros((H2, 2 * G4), f32)
    whh_src = whh_src.at[:H, :G4].set(whh_f_t)
    whh_src = whh_src.at[H:, G4:].set(whh_b_t)

    b_src = jnp.concatenate([
        (params["b_ih_f"] + params["b_hh_f"]).astype(f32),
        (params["b_ih_b"] + params["b_hh_b"]).astype(f32)])

    wx = wx_src[:, perm]                      # (2E, 8H), gate cols interleaved
    whh = whh_src[:, perm]                    # (2H, 8H)
    b = b_src[perm].reshape(1, 2 * G4)        # (1, 8H)

    # Time-major input, doubled along features with the time-reversed copy so the
    # backward direction's reversal is baked into the single hoisted projection.
    x_tm = jnp.transpose(x_btE, (1, 0, 2)).astype(f32)       # (T, B, E)
    x_dup = jnp.concatenate([x_tm, x_tm[::-1]], axis=-1)     # (T, B, 2E)

    vmem = pl.BlockSpec(memory_space=pltpu.MemorySpace.VMEM)
    out = pl.pallas_call(
        _bilstm_max_kernel,
        out_shape=jax.ShapeDtypeStruct((B, H2), f32),
        in_specs=[vmem] * 4,
        out_specs=vmem,
    )(x_dup, wx, b, whh)
    return out


bilstm_max_pallas_jit = jax.jit(bilstm_max_pallas)


# ----------------------------------------------------------------------------
# AMILSTM module glue (string -> id lookup, embedding table, parameters)
# ----------------------------------------------------------------------------
class AMILSTMPallas:
    def __init__(self, nfeat_word, nfeat_sent, word_list, vec_vocab, key):
        assert nfeat_sent % 2 == 0
        self.nfeat_word = nfeat_word
        self.nfeat_sent = nfeat_sent
        word_list = list(word_list)
        if "oov" not in word_list:
            word_list.append("oov")
        self.word2id = {w: i for i, w in enumerate(word_list)}

        # Embedding table filled from vec_vocab, zeros for missing words
        # (mirrors the pretrained_weight copy in the PyTorch module).
        emb = np.zeros((len(word_list), nfeat_word), dtype=np.float32)
        for i, w in enumerate(word_list):
            if w in vec_vocab:
                emb[i] = np.asarray(vec_vocab[w], dtype=np.float32)
        self.emb_table = jnp.asarray(emb)

        # LSTM params, PyTorch layout: weight_ih (4H, E), weight_hh (4H, H),
        # bias_ih (4H,), bias_hh (4H,); uniform(-1/sqrt(H), 1/sqrt(H)) init.
        H = nfeat_sent // 2
        k = 1.0 / np.sqrt(H)
        keys = jax.random.split(key, 8)

        def u(kk, shape):
            return jax.random.uniform(kk, shape, jnp.float32, -k, k)

        self.params = {
            "w_ih_f": u(keys[0], (4 * H, nfeat_word)),
            "w_hh_f": u(keys[1], (4 * H, H)),
            "b_ih_f": u(keys[2], (4 * H,)),
            "b_hh_f": u(keys[3], (4 * H,)),
            "w_ih_b": u(keys[4], (4 * H, nfeat_word)),
            "w_hh_b": u(keys[5], (4 * H, H)),
            "b_ih_b": u(keys[6], (4 * H,)),
            "b_hh_b": u(keys[7], (4 * H,)),
        }

    def words_to_ids(self, sents):
        # TODO(synk): Python dict string->id lookup has no Pallas equivalent; host glue.
        oov = self.word2id["oov"]
        ids = [[self.word2id.get(w, oov) for w in sent] for sent in sents]
        return jnp.asarray(np.array(ids, dtype=np.int32))

    def forward(self, sents):
        word_ids = self.words_to_ids(sents)                    # (B, T) int32
        x = jnp.take(self.emb_table, word_ids, axis=0)         # (B, T, E) XLA gather
        return bilstm_max_pallas_jit(x, self.params)           # (B, 2H)


# ----------------------------------------------------------------------------
# Pure-JAX reference (for sanity check)
# ----------------------------------------------------------------------------
def reference_forward(word_ids, emb_table, p):
    x = jnp.take(emb_table, word_ids, axis=0)

    def run_dir(x_seq, wih, whh, b_ih, b_hh):
        H = whh.shape[1]
        B = x_seq.shape[0]

        def cell(carry, x_t):
            h, c = carry
            gates = x_t @ wih.T + h @ whh.T + b_ih + b_hh
            i, f, g, o = jnp.split(gates, 4, axis=-1)
            i, f, o = jax.nn.sigmoid(i), jax.nn.sigmoid(f), jax.nn.sigmoid(o)
            g = jnp.tanh(g)
            c = f * c + i * g
            h = o * jnp.tanh(c)
            return (h, c), h

        h0 = jnp.zeros((B, H), jnp.float32)
        c0 = jnp.zeros((B, H), jnp.float32)
        _, hs = lax.scan(cell, (h0, c0), jnp.transpose(x_seq, (1, 0, 2)))
        return jnp.transpose(hs, (1, 0, 2))  # (B, T, H)

    hf = run_dir(x, p["w_ih_f"], p["w_hh_f"], p["b_ih_f"], p["b_hh_f"])
    hb = run_dir(x[:, ::-1, :], p["w_ih_b"], p["w_hh_b"], p["b_ih_b"], p["b_hh_b"])[:, ::-1, :]
    hidden = jnp.concatenate([hf, hb], axis=-1)
    return jnp.max(hidden, axis=1)


# ----------------------------------------------------------------------------
if __name__ == "__main__":
    nfeat_word = 16     # word embedding dim E
    nfeat_sent = 32     # sentence embedding dim (2H); hidden per direction H = 16
    B, T = 8, 8

    # Deterministic synthetic vocabulary + pretrained vectors.
    word_list = [f"tok{i}" for i in range(10)]
    key = jax.random.PRNGKey(0)
    key, vk = jax.random.split(key)
    vec_mat = np.asarray(jax.random.normal(vk, (len(word_list), nfeat_word)))
    # leave a couple of words out of vec_vocab to exercise the zero-vector path
    vec_vocab = {w: vec_mat[i] for i, w in enumerate(word_list) if i % 5 != 4}

    key, mk = jax.random.split(key)
    model = AMILSTMPallas(nfeat_word, nfeat_sent, word_list, vec_vocab, mk)

    # Deterministic tokenized + padded "sentences"; include unknown tokens -> 'oov'.
    key, sk = jax.random.split(key)
    tok_idx = np.asarray(jax.random.randint(sk, (B, T), 0, len(word_list) + 2))
    sents = [[f"tok{j}" if j < len(word_list) else "UNKNOWN" for j in row]
             for row in tok_idx]

    out = model.forward(sents)
    out = jax.block_until_ready(out)

    # sanity check against pure-JAX reference
    word_ids = model.words_to_ids(sents)
    ref = jax.block_until_ready(reference_forward(word_ids, model.emb_table, model.params))
    np.testing.assert_allclose(np.asarray(out), np.asarray(ref), rtol=1e-5, atol=1e-5)
    assert out.shape == (B, nfeat_sent)

    print("KERNEL_OK")
</pallas_src>

<mosaic_0001>
module attributes {stable_mosaic.version = 11 : i64} {
  func.func @_bilstm_max_kernel(%arg0: memref<8x8x32xf32, #tpu.memory_space<vmem>>, %arg1: memref<32x128xf32, #tpu.memory_space<vmem>>, %arg2: memref<1x128xf32, #tpu.memory_space<vmem>>, %arg3: memref<32x128xf32, #tpu.memory_space<vmem>>, %arg4: memref<8x32xf32, #tpu.memory_space<vmem>>) attributes {dimension_semantics = [], scalar_prefetch = 0 : i64, scratch_operands = 0 : i64, tpu.core_type = #tpu.core_type<tc>} {
    %c0 = arith.constant 0 : index
    %c0_0 = arith.constant 0 : index
    %c0_1 = arith.constant 0 : index
    %0 = vector.load %arg0[%c0, %c0_0, %c0_1] : memref<8x8x32xf32, #tpu.memory_space<vmem>>, vector<8x8x32xf32>
    %1 = vector.shape_cast %0 : vector<8x8x32xf32> to vector<64x32xf32>
    %c0_2 = arith.constant 0 : index
    %c0_3 = arith.constant 0 : index
    %2 = vector.load %arg1[%c0_2, %c0_3] : memref<32x128xf32, #tpu.memory_space<vmem>>, vector<32x128xf32>
    %cst = arith.constant dense<0.000000e+00> : vector<64x128xf32>
    %3 = tpu.matmul %1, %2, %cst {dimension_numbers = #tpu.dot_dimension_numbers<[1], [0], [0], [1], [0, 0, 1, 1], [], []>} : vector<64x32xf32>, vector<32x128xf32>, vector<64x128xf32> -> vector<64x128xf32>
    %c0_4 = arith.constant 0 : index
    %c0_5 = arith.constant 0 : index
    %4 = vector.load %arg2[%c0_4, %c0_5] : memref<1x128xf32, #tpu.memory_space<vmem>>, vector<1x128xf32>
    %5 = vector.broadcast %4 : vector<1x128xf32> to vector<64x128xf32>
    %6 = arith.addf %3, %5 : vector<64x128xf32>
    %7 = vector.shape_cast %6 : vector<64x128xf32> to vector<8x8x128xf32>
    %c0_6 = arith.constant 0 : index
    %c0_7 = arith.constant 0 : index
    %8 = vector.load %arg3[%c0_6, %c0_7] : memref<32x128xf32, #tpu.memory_space<vmem>>, vector<32x128xf32>
    %cst_8 = arith.constant 0.000000e+00 : f32
    %9 = vector.broadcast %cst_8 : f32 to vector<8x32xf32>
    %cst_9 = arith.constant 0.000000e+00 : f32
    %10 = vector.broadcast %cst_9 : f32 to vector<8x32xf32>
    %cst_10 = arith.constant 0xFF800000 : f32
    %11 = vector.broadcast %cst_10 : f32 to vector<8x32xf32>
    %12 = vector.extract_strided_slice %7 {offsets = [0, 0, 0], sizes = [1, 8, 128], strides = [1, 1, 1]} : vector<8x8x128xf32> to vector<1x8x128xf32>
    %13 = vector.shape_cast %12 : vector<1x8x128xf32> to vector<8x128xf32>
    %cst_11 = arith.constant dense<0.000000e+00> : vector<8x128xf32>
    %14 = tpu.matmul %9, %8, %cst_11 {dimension_numbers = #tpu.dot_dimension_numbers<[1], [0], [0], [1], [0, 0, 1, 1], [], []>} : vector<8x32xf32>, vector<32x128xf32>, vector<8x128xf32> -> vector<8x128xf32>
    %15 = arith.addf %13, %14 : vector<8x128xf32>
    %16 = vector.extract_strided_slice %15 {offsets = [0, 0], sizes = [8, 96], strides = [1, 1]} : vector<8x128xf32> to vector<8x96xf32>
    %17 = arith.negf %16 : vector<8x96xf32>
    %18 = math.exp %17 : vector<8x96xf32>
    %cst_12 = arith.constant 1.000000e+00 : f32
    %19 = vector.broadcast %cst_12 : f32 to vector<8x96xf32>
    %20 = arith.addf %19, %18 : vector<8x96xf32>
    %21 = arith.divf %19, %20 : vector<8x96xf32>
    %22 = vector.extract_strided_slice %15 {offsets = [0, 96], sizes = [8, 32], strides = [1, 1]} : vector<8x128xf32> to vector<8x32xf32>
    %23 = math.tanh %22 : vector<8x32xf32>
    %24 = vector.extract_strided_slice %21 {offsets = [0, 0], sizes = [8, 32], strides = [1, 1]} : vector<8x96xf32> to vector<8x32xf32>
    %25 = vector.extract_strided_slice %21 {offsets = [0, 32], sizes = [8, 32], strides = [1, 1]} : vector<8x96xf32> to vector<8x32xf32>
    %26 = vector.extract_strided_slice %21 {offsets = [0, 64], sizes = [8, 32], strides = [1, 1]} : vector<8x96xf32> to vector<8x32xf32>
    %27 = arith.mulf %25, %10 : vector<8x32xf32>
    %28 = arith.mulf %24, %23 : vector<8x32xf32>
    %29 = arith.addf %27, %28 : vector<8x32xf32>
    %30 = math.tanh %29 : vector<8x32xf32>
    %31 = arith.mulf %26, %30 : vector<8x32xf32>
    %32 = arith.maximumf %11, %31 : vector<8x32xf32>
    %33 = vector.extract_strided_slice %7 {offsets = [1, 0, 0], sizes = [1, 8, 128], strides = [1, 1, 1]} : vector<8x8x128xf32> to vector<1x8x128xf32>
    %34 = vector.shape_cast %33 : vector<1x8x128xf32> to vector<8x128xf32>
    %cst_13 = arith.constant dense<0.000000e+00> : vector<8x128xf32>
    %35 = tpu.matmul %31, %8, %cst_13 {dimension_numbers = #tpu.dot_dimension_numbers<[1], [0], [0], [1], [0, 0, 1, 1], [], []>} : vector<8x32xf32>, vector<32x128xf32>, vector<8x128xf32> -> vector<8x128xf32>
    %36 = arith.addf %34, %35 : vector<8x128xf32>
    %37 = vector.extract_strided_slice %36 {offsets = [0, 0], sizes = [8, 96], strides = [1, 1]} : vector<8x128xf32> to vector<8x96xf32>
    %38 = arith.negf %37 : vector<8x96xf32>
    %39 = math.exp %38 : vector<8x96xf32>
    %cst_14 = arith.constant 1.000000e+00 : f32
    %40 = vector.broadcast %cst_14 : f32 to vector<8x96xf32>
    %41 = arith.addf %40, %39 : vector<8x96xf32>
    %42 = arith.divf %40, %41 : vector<8x96xf32>
    %43 = vector.extract_strided_slice %36 {offsets = [0, 96], sizes = [8, 32], strides = [1, 1]} : vector<8x128xf32> to vector<8x32xf32>
    %44 = math.tanh %43 : vector<8x32xf32>
    %45 = vector.extract_strided_slice %42 {offsets = [0, 0], sizes = [8, 32], strides = [1, 1]} : vector<8x96xf32> to vector<8x32xf32>
    %46 = vector.extract_strided_slice %42 {offsets = [0, 32], sizes = [8, 32], strides = [1, 1]} : vector<8x96xf32> to vector<8x32xf32>
    %47 = vector.extract_strided_slice %42 {offsets = [0, 64], sizes = [8, 32], strides = [1, 1]} : vector<8x96xf32> to vector<8x32xf32>
    %48 = arith.mulf %46, %29 : vector<8x32xf32>
    %49 = arith.mulf %45, %44 : vector<8x32xf32>
    %50 = arith.addf %48, %49 : vector<8x32xf32>
    %51 = math.tanh %50 : vector<8x32xf32>
    %52 = arith.mulf %47, %51 : vector<8x32xf32>
    %53 = arith.maximumf %32, %52 : vector<8x32xf32>
    %54 = vector.extract_strided_slice %7 {offsets = [2, 0, 0], sizes = [1, 8, 128], strides = [1, 1, 1]} : vector<8x8x128xf32> to vector<1x8x128xf32>
    %55 = vector.shape_cast %54 : vector<1x8x128xf32> to vector<8x128xf32>
    %cst_15 = arith.constant dense<0.000000e+00> : vector<8x128xf32>
    %56 = tpu.matmul %52, %8, %cst_15 {dimension_numbers = #tpu.dot_dimension_numbers<[1], [0], [0], [1], [0, 0, 1, 1], [], []>} : vector<8x32xf32>, vector<32x128xf32>, vector<8x128xf32> -> vector<8x128xf32>
    %57 = arith.addf %55, %56 : vector<8x128xf32>
    %58 = vector.extract_strided_slice %57 {offsets = [0, 0], sizes = [8, 96], strides = [1, 1]} : vector<8x128xf32> to vector<8x96xf32>
    %59 = arith.negf %58 : vector<8x96xf32>
    %60 = math.exp %59 : vector<8x96xf32>
    %cst_16 = arith.constant 1.000000e+00 : f32
    %61 = vector.broadcast %cst_16 : f32 to vector<8x96xf32>
    %62 = arith.addf %61, %60 : vector<8x96xf32>
    %63 = arith.divf %61, %62 : vector<8x96xf32>
    %64 = vector.extract_strided_slice %57 {offsets = [0, 96], sizes = [8, 32], strides = [1, 1]} : vector<8x128xf32> to vector<8x32xf32>
    %65 = math.tanh %64 : vector<8x32xf32>
    %66 = vector.extract_strided_slice %63 {offsets = [0, 0], sizes = [8, 32], strides = [1, 1]} : vector<8x96xf32> to vector<8x32xf32>
    %67 = vector.extract_strided_slice %63 {offsets = [0, 32], sizes = [8, 32], strides = [1, 1]} : vector<8x96xf32> to vector<8x32xf32>
    %68 = vector.extract_strided_slice %63 {offsets = [0, 64], sizes = [8, 32], strides = [1, 1]} : vector<8x96xf32> to vector<8x32xf32>
    %69 = arith.mulf %67, %50 : vector<8x32xf32>
    %70 = arith.mulf %66, %65 : vector<8x32xf32>
    %71 = arith.addf %69, %70 : vector<8x32xf32>
    %72 = math.tanh %71 : vector<8x32xf32>
    %73 = arith.mulf %68, %72 : vector<8x32xf32>
    %74 = arith.maximumf %53, %73 : vector<8x32xf32>
    %75 = vector.extract_strided_slice %7 {offsets = [3, 0, 0], sizes = [1, 8, 128], strides = [1, 1, 1]} : vector<8x8x128xf32> to vector<1x8x128xf32>
    %76 = vector.shape_cast %75 : vector<1x8x128xf32> to vector<8x128xf32>
    %cst_17 = arith.constant dense<0.000000e+00> : vector<8x128xf32>
    %77 = tpu.matmul %73, %8, %cst_17 {dimension_numbers = #tpu.dot_dimension_numbers<[1], [0], [0], [1], [0, 0, 1, 1], [], []>} : vector<8x32xf32>, vector<32x128xf32>, vector<8x128xf32> -> vector<8x128xf32>
    %78 = arith.addf %76, %77 : vector<8x128xf32>
    %79 = vector.extract_strided_slice %78 {offsets = [0, 0], sizes = [8, 96], strides = [1, 1]} : vector<8x128xf32> to vector<8x96xf32>
    %80 = arith.negf %79 : vector<8x96xf32>
    %81 = math.exp %80 : vector<8x96xf32>
    %cst_18 = arith.constant 1.000000e+00 : f32
    %82 = vector.broadcast %cst_18 : f32 to vector<8x96xf32>
    %83 = arith.addf %82, %81 : vector<8x96xf32>
    %84 = arith.divf %82, %83 : vector<8x96xf32>
    %85 = vector.extract_strided_slice %78 {offsets = [0, 96], sizes = [8, 32], strides = [1, 1]} : vector<8x128xf32> to vector<8x32xf32>
    %86 = math.tanh %85 : vector<8x32xf32>
    %87 = vector.extract_strided_slice %84 {offsets = [0, 0], sizes = [8, 32], strides = [1, 1]} : vector<8x96xf32> to vector<8x32xf32>
    %88 = vector.extract_strided_slice %84 {offsets = [0, 32], sizes = [8, 32], strides = [1, 1]} : vector<8x96xf32> to vector<8x32xf32>
    %89 = vector.extract_strided_slice %84 {offsets = [0, 64], sizes = [8, 32], strides = [1, 1]} : vector<8x96xf32> to vector<8x32xf32>
    %90 = arith.mulf %88, %71 : vector<8x32xf32>
    %91 = arith.mulf %87, %86 : vector<8x32xf32>
    %92 = arith.addf %90, %91 : vector<8x32xf32>
    %93 = math.tanh %92 : vector<8x32xf32>
    %94 = arith.mulf %89, %93 : vector<8x32xf32>
    %95 = arith.maximumf %74, %94 : vector<8x32xf32>
    %96 = vector.extract_strided_slice %7 {offsets = [4, 0, 0], sizes = [1, 8, 128], strides = [1, 1, 1]} : vector<8x8x128xf32> to vector<1x8x128xf32>
    %97 = vector.shape_cast %96 : vector<1x8x128xf32> to vector<8x128xf32>
    %cst_19 = arith.constant dense<0.000000e+00> : vector<8x128xf32>
    %98 = tpu.matmul %94, %8, %cst_19 {dimension_numbers = #tpu.dot_dimension_numbers<[1], [0], [0], [1], [0, 0, 1, 1], [], []>} : vector<8x32xf32>, vector<32x128xf32>, vector<8x128xf32> -> vector<8x128xf32>
    %99 = arith.addf %97, %98 : vector<8x128xf32>
    %100 = vector.extract_strided_slice %99 {offsets = [0, 0], sizes = [8, 96], strides = [1, 1]} : vector<8x128xf32> to vector<8x96xf32>
    %101 = arith.negf %100 : vector<8x96xf32>
    %102 = math.exp %101 : vector<8x96xf32>
    %cst_20 = arith.constant 1.000000e+00 : f32
    %103 = vector.broadcast %cst_20 : f32 to vector<8x96xf32>
    %104 = arith.addf %103, %102 : vector<8x96xf32>
    %105 = arith.divf %103, %104 : vector<8x96xf32>
    %106 = vector.extract_strided_slice %99 {offsets = [0, 96], sizes = [8, 32], strides = [1, 1]} : vector<8x128xf32> to vector<8x32xf32>
    %107 = math.tanh %106 : vector<8x32xf32>
    %108 = vector.extract_strided_slice %105 {offsets = [0, 0], sizes = [8, 32], strides = [1, 1]} : vector<8x96xf32> to vector<8x32xf32>
    %109 = vector.extract_strided_slice %105 {offsets = [0, 32], sizes = [8, 32], strides = [1, 1]} : vector<8x96xf32> to vector<8x32xf32>
    %110 = vector.extract_strided_slice %105 {offsets = [0, 64], sizes = [8, 32], strides = [1, 1]} : vector<8x96xf32> to vector<8x32xf32>
    %111 = arith.mulf %109, %92 : vector<8x32xf32>
    %112 = arith.mulf %108, %107 : vector<8x32xf32>
    %113 = arith.addf %111, %112 : vector<8x32xf32>
    %114 = math.tanh %113 : vector<8x32xf32>
    %115 = arith.mulf %110, %114 : vector<8x32xf32>
    %116 = arith.maximumf %95, %115 : vector<8x32xf32>
    %117 = vector.extract_strided_slice %7 {offsets = [5, 0, 0], sizes = [1, 8, 128], strides = [1, 1, 1]} : vector<8x8x128xf32> to vector<1x8x128xf32>
    %118 = vector.shape_cast %117 : vector<1x8x128xf32> to vector<8x128xf32>
    %cst_21 = arith.constant dense<0.000000e+00> : vector<8x128xf32>
    %119 = tpu.matmul %115, %8, %cst_21 {dimension_numbers = #tpu.dot_dimension_numbers<[1], [0], [0], [1], [0, 0, 1, 1], [], []>} : vector<8x32xf32>, vector<32x128xf32>, vector<8x128xf32> -> vector<8x128xf32>
    %120 = arith.addf %118, %119 : vector<8x128xf32>
    %121 = vector.extract_strided_slice %120 {offsets = [0, 0], sizes = [8, 96], strides = [1, 1]} : vector<8x128xf32> to vector<8x96xf32>
    %122 = arith.negf %121 : vector<8x96xf32>
    %123 = math.exp %122 : vector<8x96xf32>
    %cst_22 = arith.constant 1.000000e+00 : f32
    %124 = vector.broadcast %cst_22 : f32 to vector<8x96xf32>
    %125 = arith.addf %124, %123 : vector<8x96xf32>
    %126 = arith.divf %124, %125 : vector<8x96xf32>
    %127 = vector.extract_strided_slice %120 {offsets = [0, 96], sizes = [8, 32], strides = [1, 1]} : vector<8x128xf32> to vector<8x32xf32>
    %128 = math.tanh %127 : vector<8x32xf32>
    %129 = vector.extract_strided_slice %126 {offsets = [0, 0], sizes = [8, 32], strides = [1, 1]} : vector<8x96xf32> to vector<8x32xf32>
    %130 = vector.extract_strided_slice %126 {offsets = [0, 32], sizes = [8, 32], strides = [1, 1]} : vector<8x96xf32> to vector<8x32xf32>
    %131 = vector.extract_strided_slice %126 {offsets = [0, 64], sizes = [8, 32], strides = [1, 1]} : vector<8x96xf32> to vector<8x32xf32>
    %132 = arith.mulf %130, %113 : vector<8x32xf32>
    %133 = arith.mulf %129, %128 : vector<8x32xf32>
    %134 = arith.addf %132, %133 : vector<8x32xf32>
    %135 = math.tanh %134 : vector<8x32xf32>
    %136 = arith.mulf %131, %135 : vector<8x32xf32>
    %137 = arith.maximumf %116, %136 : vector<8x32xf32>
    %138 = vector.extract_strided_slice %7 {offsets = [6, 0, 0], sizes = [1, 8, 128], strides = [1, 1, 1]} : vector<8x8x128xf32> to vector<1x8x128xf32>
    %139 = vector.shape_cast %138 : vector<1x8x128xf32> to vector<8x128xf32>
    %cst_23 = arith.constant dense<0.000000e+00> : vector<8x128xf32>
    %140 = tpu.matmul %136, %8, %cst_23 {dimension_numbers = #tpu.dot_dimension_numbers<[1], [0], [0], [1], [0, 0, 1, 1], [], []>} : vector<8x32xf32>, vector<32x128xf32>, vector<8x128xf32> -> vector<8x128xf32>
    %141 = arith.addf %139, %140 : vector<8x128xf32>
    %142 = vector.extract_strided_slice %141 {offsets = [0, 0], sizes = [8, 96], strides = [1, 1]} : vector<8x128xf32> to vector<8x96xf32>
    %143 = arith.negf %142 : vector<8x96xf32>
    %144 = math.exp %143 : vector<8x96xf32>
    %cst_24 = arith.constant 1.000000e+00 : f32
    %145 = vector.broadcast %cst_24 : f32 to vector<8x96xf32>
    %146 = arith.addf %145, %144 : vector<8x96xf32>
    %147 = arith.divf %145, %146 : vector<8x96xf32>
    %148 = vector.extract_strided_slice %141 {offsets = [0, 96], sizes = [8, 32], strides = [1, 1]} : vector<8x128xf32> to vector<8x32xf32>
    %149 = math.tanh %148 : vector<8x32xf32>
    %150 = vector.extract_strided_slice %147 {offsets = [0, 0], sizes = [8, 32], strides = [1, 1]} : vector<8x96xf32> to vector<8x32xf32>
    %151 = vector.extract_strided_slice %147 {offsets = [0, 32], sizes = [8, 32], strides = [1, 1]} : vector<8x96xf32> to vector<8x32xf32>
    %152 = vector.extract_strided_slice %147 {offsets = [0, 64], sizes = [8, 32], strides = [1, 1]} : vector<8x96xf32> to vector<8x32xf32>
    %153 = arith.mulf %151, %134 : vector<8x32xf32>
    %154 = arith.mulf %150, %149 : vector<8x32xf32>
    %155 = arith.addf %153, %154 : vector<8x32xf32>
    %156 = math.tanh %155 : vector<8x32xf32>
    %157 = arith.mulf %152, %156 : vector<8x32xf32>
    %158 = arith.maximumf %137, %157 : vector<8x32xf32>
    %159 = vector.extract_strided_slice %7 {offsets = [7, 0, 0], sizes = [1, 8, 128], strides = [1, 1, 1]} : vector<8x8x128xf32> to vector<1x8x128xf32>
    %160 = vector.shape_cast %159 : vector<1x8x128xf32> to vector<8x128xf32>
    %cst_25 = arith.constant dense<0.000000e+00> : vector<8x128xf32>
    %161 = tpu.matmul %157, %8, %cst_25 {dimension_numbers = #tpu.dot_dimension_numbers<[1], [0], [0], [1], [0, 0, 1, 1], [], []>} : vector<8x32xf32>, vector<32x128xf32>, vector<8x128xf32> -> vector<8x128xf32>
    %162 = arith.addf %160, %161 : vector<8x128xf32>
    %163 = vector.extract_strided_slice %162 {offsets = [0, 0], sizes = [8, 96], strides = [1, 1]} : vector<8x128xf32> to vector<8x96xf32>
    %164 = arith.negf %163 : vector<8x96xf32>
    %165 = math.exp %164 : vector<8x96xf32>
    %cst_26 = arith.constant 1.000000e+00 : f32
    %166 = vector.broadcast %cst_26 : f32 to vector<8x96xf32>
    %167 = arith.addf %166, %165 : vector<8x96xf32>
    %168 = arith.divf %166, %167 : vector<8x96xf32>
    %169 = vector.extract_strided_slice %162 {offsets = [0, 96], sizes = [8, 32], strides = [1, 1]} : vector<8x128xf32> to vector<8x32xf32>
    %170 = math.tanh %169 : vector<8x32xf32>
    %171 = vector.extract_strided_slice %168 {offsets = [0, 0], sizes = [8, 32], strides = [1, 1]} : vector<8x96xf32> to vector<8x32xf32>
    %172 = vector.extract_strided_slice %168 {offsets = [0, 32], sizes = [8, 32], strides = [1, 1]} : vector<8x96xf32> to vector<8x32xf32>
    %173 = vector.extract_strided_slice %168 {offsets = [0, 64], sizes = [8, 32], strides = [1, 1]} : vector<8x96xf32> to vector<8x32xf32>
    %174 = arith.mulf %172, %155 : vector<8x32xf32>
    %175 = arith.mulf %171, %170 : vector<8x32xf32>
    %176 = arith.addf %174, %175 : vector<8x32xf32>
    %177 = math.tanh %176 : vector<8x32xf32>
    %178 = arith.mulf %173, %177 : vector<8x32xf32>
    %179 = arith.maximumf %158, %178 : vector<8x32xf32>
    %c0_27 = arith.constant 0 : index
    %c0_28 = arith.constant 0 : index
    %180 = vector.load %arg4[%c0_27, %c0_28] : memref<8x32xf32, #tpu.memory_space<vmem>>, vector<8x32xf32>
    tpu.vector_store %arg4[%c0_27, %c0_28], %179 {strides = array<i32>} : memref<8x32xf32, #tpu.memory_space<vmem>>, vector<8x32xf32>,
    return
  }
}

</mosaic_0001>

<bundles_post_ra>
// kernel: bilstm_max_pallas.1
= control target key start
LH: loop header
LB: loop body
LE: loop exit
PB: predicated region body
PF: predicated region fallthrough
CT: control target
= control target key end

     0   :  { %s967_s0 = inlined_call_operand.vmem [shape: f32[8,8,32], index: 0, kind: input, shape index: {}]   ;;  %s968_s1 = inlined_call_operand.vmem [shape: f32[32,128], index: 1, kind: input, shape index: {}]   ;;  %s969_s2 = inlined_call_operand.vmem [shape: f32[1,128], index: 2, kind: input, shape index: {}]   ;;  %s970_s3 = inlined_call_operand.vmem [shape: f32[32,128], index: 3, kind: input, shape index: {}]   ;;  %s971_s4 = inlined_call_operand.hbm [shape: f32[8,32], index: 4, kind: output, shape index: {}]  }
   0x1   :  { %v29_v0 = vld [vmem:[%s968_s1 + $0x18] sm:$0xff]  ;;  %v28_v1 = vld [vmem:[%s968_s1 + $0x10] sm:$0xff]  ;;  %v27_v2 = vld [vmem:[%s968_s1 + $0x8] sm:$0xff] }
   0x2   :  { %657 = vmatpush.msra.mxu1 %v29_v0  ;;  %71 = vmatpush.msra.mxu0 %v29_v0  ;;  %v26_v3 = vld [vmem:[%s968_s1] sm:$0xff] }
   0x3   :  { %658 = vmatpush.msra.mxu2 %v29_v0  ;;  %659 = vmatpush.msra.mxu3 %v29_v0 }
   0x4   :  { %660 = vmatpush.msra.mxu1 %v28_v1  ;;  %72 = vmatpush.msra.mxu0 %v28_v1 }
   0x5   :  { %661 = vmatpush.msra.mxu2 %v28_v1  ;;  %662 = vmatpush.msra.mxu3 %v28_v1 }
   0x6   :  { %9 = vsyncpa [#allocation3], 0  ;;  %663 = vmatpush.msra.mxu1 %v27_v2  ;;  %v22_v4 = vld [vmem:[%s967_s0 + $0x20] sm:$0xff]  ;;  %vm34_vm0 = vcmask 261120   ;;  %73 = vmatpush.msra.mxu0 %v27_v2  ;;  %v814_v6 = vld [vmem:[%s970_s3 + $0x18] sm:$0xff]  ;;  %v764_v10 = vmov 0.0  }
   0x7   :  { %v18_v5 = vld [vmem:[%s967_s0] sm:$0xff]  ;;  %664 = vmatpush.msra.mxu2 %v27_v2  ;;  %665 = vmatpush.msra.mxu3 %v27_v2  ;;  %v820_v7 = vld [vmem:[%s970_s3 + $0x10] sm:$0xff]  ;;  %v827_v8 = vld [vmem:[%s970_s3 + $0x8] sm:$0xff]  ;;  %s765_s9 = smov 32   ;;  %s766_s11 = smov 64  }
   0x8   :  { %666 = vmatpush.msra.mxu1 %v26_v3  ;;  %74 = vmatpush.msra.mxu0 %v26_v3  ;;  %v835_v9 = vld [vmem:[%s970_s3] sm:$0xff]  ;;  %v23_v37 = vld [vmem:[%s967_s0 + $0x28] sm:$0xff]  ;;  %s625_s25 = sshll.u32 %s971_s4, 4  ;;  %s626_s25 = int_to_ptr.hbm [resolvable:$true] %s625_s25 }
   0x9   :  { %638 = vmatmul.msk.f32.vlgmr.msra.gmra.mxu1 %vm34_vm0, %v22_v4  ;;  %634 = vmatmul.msk.f32.vlgmr.msra.gmra.mxu0 %vm34_vm0, %v18_v5  ;;  %v858_v13 = vld [vmem:[%s969_s2] ss:$0 sm:$0xff]  ;;  %v19_v40 = vld [vmem:[%s967_s0 + $0x8] sm:$0xff]  ;;  %v25_v4 = vld [vmem:[%s967_s0 + $0x38] sm:$0xff] }
   0xa   :  { %119 = vmatpush.msrb.mxu1 %v814_v6  ;;  %667 = vmatpush.msra.mxu2 %v26_v3 }
   0xb   :  { %668 = vmatpush.msra.mxu3 %v26_v3  ;;  %639 = vmatmul.msk.f32.vlgmr.msra.gmra.mxu2 %vm34_vm0, %v23_v37  ;;  %v24_v3 = vld [vmem:[%s967_s0 + $0x30] sm:$0xff]  ;;  %v21_v37 = vld [vmem:[%s967_s0 + $0x18] sm:$0xff] }
   0xc   :  { %182 = vmatpush.msrb.mxu2 %v814_v6  ;;  %120 = vmatpush.msrb.mxu1 %v820_v7 }
   0xd   :  { %246 = vmatpush.msrb.mxu3 %v814_v6 }
   0xe   :  { %183 = vmatpush.msrb.mxu2 %v820_v7  ;;  %121 = vmatpush.msrb.mxu1 %v827_v8 }
   0xf   :  { %247 = vmatpush.msrb.mxu3 %v820_v7 }
  0x10   :  { %184 = vmatpush.msrb.mxu2 %v827_v8  ;;  %122 = vmatpush.msrb.mxu1 %v835_v9 }
  0x11   :  { %248 = vmatpush.msrb.mxu3 %v827_v8  ;;  %123 = vmatmul.f32.vlgmr.msrb.gmra.mxu1 %v764_v10 }
  0x12   :  { %185 = vmatpush.msrb.mxu2 %v835_v9  ;;  %310 = vmatpush.msra.mxu1 %v814_v6 }
  0x13   :  { %249 = vmatpush.msrb.mxu3 %v835_v9  ;;  %635 = vmatmul.msk.f32.gmra.mxu0 %vm34_vm0, %v19_v40 }
  0x14   :  { %311 = vmatpush.msra.mxu1 %v820_v7  ;;  %374 = vmatpush.msra.mxu2 %v814_v6 }
  0x15   :  { %640 = vmatmul.msk.f32.vlgmr.msra.gmra.mxu3 %vm34_vm0, %v24_v3 }
  0x16   :  { %312 = vmatpush.msra.mxu1 %v827_v8  ;;  %375 = vmatpush.msra.mxu2 %v820_v7 }
  0x17   :  { %438 = vmatpush.msra.mxu3 %v814_v6 }
  0x18   :  { %313 = vmatpush.msra.mxu1 %v835_v9  ;;  %376 = vmatpush.msra.mxu2 %v827_v8 }
  0x19   :  { %439 = vmatpush.msra.mxu3 %v820_v7 }
  0x1a   :  { %502 = vmatpush.msrb.mxu1 %v814_v6  ;;  %377 = vmatpush.msra.mxu2 %v835_v9 }
  0x1b   :  { %440 = vmatpush.msra.mxu3 %v827_v8 }
  0x1c   :  { %503 = vmatpush.msrb.mxu1 %v820_v7 }
  0x1d   :  { %441 = vmatpush.msra.mxu3 %v835_v9 }
  0x1e   :  { %504 = vmatpush.msrb.mxu1 %v827_v8  ;;  %641 = vmatmul.msk.f32.gmra.mxu3 %vm34_vm0, %v25_v4 }
  0x20   :  { %505 = vmatpush.msrb.mxu1 %v835_v9 }
  0x86   :  { %v853_v11 = vpop.f32.mrf.mxu1  ;;  %v76_v12 = vpop.f32.mrf.mxu0 }
  0x87   :  { %v77_v14 = vadd.f32 %v858_v13, %v76_v12 }
  0x8e   :  { %v124_v15 = vpop.f32.mrf.mxu1  ;;  %v885_v42 = vpop.f32.mrf.mxu2 }
  0x8f   :  { %v127_v16 = vadd.f32 %v124_v15, %v77_v14 }
  0x90   :  { %v79_v43 = vpop.f32.mrf.mxu0 }
  0x91   :  { %674 = vtanh.f32 %v127_v16  ;;  %v642_v18 = vmul.f32 -1.442695, %v127_v16  ;;  %v80_v44 = vadd.f32 %v858_v13, %v79_v43 }
  0x93   :  { %676 = vpow2.f32 %v642_v18 }
  0x97   :  { %v675_v17 = vpop.eup %674 }
  0x98   :  { %150 = vrot.lane.b32.xlu0 %v675_v17, %s765_s9  ;;  %v909_v12 = vpop.f32.mrf.mxu3 }
  0x99   :  { %v677_v19 = vpop.eup %676 }
  0x9a   :  { %v131_v20 = vadd.f32 1.0, %v677_v19 }
  0x9c   :  { %678 = vrcp.f32 %v131_v20  ;;  %v143_v26 = vand.u32 2147483648, %v131_v20  ;;  %vm137_vm2 = vweird.f32 %v131_v20  ;;  %v141_v27 = vand.u32 2147483647, %v131_v20 }
  0x9e   :  { %v144_v29 = vor.u32 1.1754944e-38, %v143_v26  ;;  %vm142_vm4 = vcmp.eq.f32.partialorder %v141_v27, 8.507059e+37 }
  0xa2   :  { %v679_v21 = vpop.eup %678 }
  0xa3   :  { %v133_v22 = vmul.f32 %v679_v21, %v131_v20  ;;  %vm138_vm1 = vweird.f32 %v679_v21 }
  0xa4   :  { %vm139_vm3 = vmor %vm137_vm2, %vm138_vm1 }
  0xa5   :  { %v134_v23 = vsub.f32 1.0, %v133_v22 }
  0xa7   :  { %v135_v24 = vmul.f32 %v679_v21, %v134_v23 }
  0xa9   :  { %v136_v25 = vadd.f32 %v679_v21, %v135_v24 }
  0xab   :  { %v140_v28 = vsel %vm139_vm3, %v679_v21, %v136_v25 }
  0xac   :  { %v145_v31 = vsel %vm142_vm4, %v144_v29, %v140_v28 }
  0xad   :  { %v148_v33 = vmul.f32 0.0, %v145_v31 }
 0x10a   :  { %v151_v30 = vpop.permute.xlu0 %150 }
 0x10b   :  { %v153_v32 = vmul.f32 %v151_v30, %v145_v31 }
 0x10d   :  { %155 = vrot.lane.b32.xlu0 %v153_v32, %s765_s9 }
 0x17f   :  { %v156_v34 = vpop.permute.xlu0 %155 }
 0x180   :  { %v158_v35 = vadd.f32 %v156_v34, %v148_v33 }
 0x182   :  { %680 = vtanh.f32 %v158_v35 }
 0x188   :  { %v681_v36 = vpop.eup %680 }
 0x189   :  { %161 = vrot.lane.b32.xlu1 %v681_v36, %s765_s9 }
 0x1fb   :  { %v162_v38 = vpop.permute.xlu1 %161 }
 0x1fc   :  { %v872_v39 = vmul.f32 %v162_v38, %v145_v31 }
 0x1fe   :  { %166 = vrot.lane.b32.xlu1 %v872_v39, %s766_s11 }
 0x270   :  { %v167_v41 = vpop.permute.xlu1 %166 }
 0x271   :  { %643 = vmatmul.msk.f32.vlgmr.msrb.gmra.mxu2 %vm34_vm0, %v167_v41 }
 0x272   :  { %566 = vmatpush.msrb.mxu2 %v814_v6  ;;  %v20_v6 = vld [vmem:[%s967_s0 + $0x10] sm:$0xff]  ;;  %s767_s0 = smov [#allocation2]  }
 0x273   :  { %636 = vmatmul.msk.f32.gmra.mxu0 %vm34_vm0, %v20_v6  ;;  %s623_s22 = sshll.u32 %s767_s0, 4  ;;  %s624_s22 = int_to_ptr.vmem [resolvable:$true] %s623_s22 }
 0x274   :  { %567 = vmatpush.msrb.mxu2 %v820_v7 }
 0x276   :  { %568 = vmatpush.msrb.mxu2 %v827_v8  ;;  %v911_v8 = vpop.f32.mrf.mxu3 }
 0x278   :  { %569 = vmatpush.msrb.mxu2 %v835_v9 }
 0x27b   :  { %637 = vmatmul.msk.f32.gmra.mxu0 %vm34_vm0, %v21_v37 }
 0x2f0   :  { %v82_v9 = vpop.f32.mrf.mxu0 }
 0x2f1   :  { %v83_v14 = vadd.f32 %v858_v13, %v82_v9 }
 0x2f4   :  { %v187_v45 = vpop.f32.mrf.mxu2 }
 0x2f5   :  { %v190_v46 = vadd.f32 %v187_v45, %v80_v44 }
 0x2f7   :  { %682 = vtanh.f32 %v190_v46  ;;  %v644_v48 = vmul.f32 -1.442695, %v190_v46 }
 0x2f8   :  { %v85_v45 = vpop.f32.mrf.mxu0 }
 0x2f9   :  { %684 = vpow2.f32 %v644_v48  ;;  %v86_v46 = vadd.f32 %v858_v13, %v85_v45 }
 0x2fd   :  { %v683_v47 = vpop.eup %682 }
 0x2fe   :  { %213 = vrot.lane.b32.xlu2 %v683_v47, %s765_s9 }
 0x2ff   :  { %v685_v49 = vpop.eup %684 }
 0x300   :  { %v194_v50 = vadd.f32 1.0, %v685_v49 }
 0x302   :  { %686 = vrcp.f32 %v194_v50  ;;  %v206_v56 = vand.u32 2147483648, %v194_v50  ;;  %vm200_vm6 = vweird.f32 %v194_v50  ;;  %v204_v57 = vand.u32 2147483647, %v194_v50 }
 0x304   :  { %v207_v59 = vor.u32 1.1754944e-38, %v206_v56  ;;  %vm205_vm8 = vcmp.eq.f32.partialorder %v204_v57, 8.507059e+37 }
 0x308   :  { %v687_v51 = vpop.eup %686 }
 0x309   :  { %v196_v52 = vmul.f32 %v687_v51, %v194_v50  ;;  %vm201_vm5 = vweird.f32 %v687_v51 }
 0x30a   :  { %vm202_vm7 = vmor %vm200_vm6, %vm201_vm5 }
 0x30b   :  { %v197_v53 = vsub.f32 1.0, %v196_v52 }
 0x30d   :  { %v198_v54 = vmul.f32 %v687_v51, %v197_v53 }
 0x30f   :  { %v199_v55 = vadd.f32 %v687_v51, %v198_v54 }
 0x311   :  { %v203_v58 = vsel %vm202_vm7, %v687_v51, %v199_v55 }
 0x312   :  { %v208_v61 = vsel %vm205_vm8, %v207_v59, %v203_v58 }
 0x313   :  { %v211_v63 = vmul.f32 %v208_v61, %v158_v35 }
 0x358   :  { %v214_v60 = vpop.permute.xlu2 %213 }
 0x359   :  { %v216_v62 = vmul.f32 %v214_v60, %v208_v61 }
 0x35b   :  { %218 = vrot.lane.b32.xlu2 %v216_v62, %s765_s9 }
 0x3b5   :  { %v219_v0 = vpop.permute.xlu2 %218 }
 0x3b6   :  { %v221_v1 = vadd.f32 %v219_v0, %v211_v63 }
 0x3b8   :  { %688 = vtanh.f32 %v221_v1 }
 0x3be   :  { %v689_v2 = vpop.eup %688 }
 0x3bf   :  { %224 = vrot.lane.b32.xlu0 %v689_v2, %s765_s9 }
 0x431   :  { %v225_v5 = vpop.permute.xlu0 %224 }
 0x432   :  { %v227_v10 = vmul.f32 %v225_v5, %v208_v61 }
 0x434   :  { %230 = vrot.lane.b32.xlu1 %v227_v10, %s766_s11  ;;  %v228_v40 = vmax.f32 %v872_v39, %v227_v10 }
 0x4a6   :  { %v231_v7 = vpop.permute.xlu1 %230 }
 0x4a7   :  { %645 = vmatmul.msk.f32.vlgmr.msrb.gmra.mxu3 %vm34_vm0, %v231_v7  ;;  %v89_v7 = vadd.f32 %v858_v13, %v853_v11 }
 0x52a   :  { %v251_v15 = vpop.f32.mrf.mxu3 }
 0x52b   :  { %v254_v16 = vadd.f32 %v251_v15, %v83_v14 }
 0x52d   :  { %690 = vtanh.f32 %v254_v16  ;;  %v646_v18 = vmul.f32 -1.442695, %v254_v16 }
 0x52f   :  { %692 = vpow2.f32 %v646_v18 }
 0x533   :  { %v691_v17 = vpop.eup %690 }
 0x534   :  { %277 = vrot.lane.b32.xlu2 %v691_v17, %s765_s9 }
 0x535   :  { %v693_v19 = vpop.eup %692 }
 0x536   :  { %v258_v20 = vadd.f32 1.0, %v693_v19 }
 0x538   :  { %694 = vrcp.f32 %v258_v20  ;;  %v270_v26 = vand.u32 2147483648, %v258_v20  ;;  %vm264_vm10 = vweird.f32 %v258_v20  ;;  %v268_v27 = vand.u32 2147483647, %v258_v20 }
 0x53a   :  { %v271_v29 = vor.u32 1.1754944e-38, %v270_v26  ;;  %vm269_vm12 = vcmp.eq.f32.partialorder %v268_v27, 8.507059e+37 }
 0x53e   :  { %v695_v21 = vpop.eup %694 }
 0x53f   :  { %v260_v22 = vmul.f32 %v695_v21, %v258_v20  ;;  %vm265_vm9 = vweird.f32 %v695_v21 }
 0x540   :  { %vm266_vm11 = vmor %vm264_vm10, %vm265_vm9 }
 0x541   :  { %v261_v23 = vsub.f32 1.0, %v260_v22 }
 0x543   :  { %v262_v24 = vmul.f32 %v695_v21, %v261_v23 }
 0x545   :  { %v263_v25 = vadd.f32 %v695_v21, %v262_v24 }
 0x547   :  { %v267_v28 = vsel %vm266_vm11, %v695_v21, %v263_v25 }
 0x548   :  { %v272_v31 = vsel %vm269_vm12, %v271_v29, %v267_v28 }
 0x549   :  { %v275_v33 = vmul.f32 %v272_v31, %v221_v1 }
 0x58e   :  { %v278_v30 = vpop.permute.xlu2 %277 }
 0x58f   :  { %v280_v32 = vmul.f32 %v278_v30, %v272_v31 }
 0x591   :  { %282 = vrot.lane.b32.xlu0 %v280_v32, %s765_s9 }
 0x603   :  { %v283_v34 = vpop.permute.xlu0 %282 }
 0x604   :  { %v285_v35 = vadd.f32 %v283_v34, %v275_v33 }
 0x606   :  { %696 = vtanh.f32 %v285_v35 }
 0x60c   :  { %v697_v36 = vpop.eup %696 }
 0x60d   :  { %288 = vrot.lane.b32.xlu1 %v697_v36, %s765_s9 }
 0x67f   :  { %v289_v38 = vpop.permute.xlu1 %288 }
 0x680   :  { %v291_v41 = vmul.f32 %v289_v38, %v272_v31  ;;  %v92_v38 = vadd.f32 %v858_v13, %v885_v42 }
 0x682   :  { %v922_v43 = vmax.f32 %v228_v40, %v291_v41  ;;  %294 = vrot.lane.b32.xlu2 %v291_v41, %s766_s11 }
 0x6dc   :  { %v295_v44 = vpop.permute.xlu2 %294 }
 0x6dd   :  { %647 = vmatmul.msk.f32.vlgmr.msra.gmra.mxu1 %vm34_vm0, %v295_v44 }
 0x75a   :  { %v315_v47 = vpop.f32.mrf.mxu1 }
 0x75b   :  { %v318_v48 = vadd.f32 %v315_v47, %v86_v46 }
 0x75d   :  { %698 = vtanh.f32 %v318_v48  ;;  %v648_v50 = vmul.f32 -1.442695, %v318_v48 }
 0x75f   :  { %700 = vpow2.f32 %v648_v50 }
 0x763   :  { %v699_v49 = vpop.eup %698 }
 0x764   :  { %341 = vrot.lane.b32.xlu0 %v699_v49, %s765_s9 }
 0x765   :  { %v701_v39 = vpop.eup %700 }
 0x766   :  { %v322_v51 = vadd.f32 1.0, %v701_v39 }
 0x768   :  { %702 = vrcp.f32 %v322_v51  ;;  %v334_v57 = vand.u32 2147483648, %v322_v51  ;;  %vm328_vm14 = vweird.f32 %v322_v51  ;;  %v332_v58 = vand.u32 2147483647, %v322_v51 }
 0x76a   :  { %v335_v60 = vor.u32 1.1754944e-38, %v334_v57  ;;  %vm333_vm1 = vcmp.eq.f32.partialorder %v332_v58, 8.507059e+37 }
 0x76e   :  { %v703_v52 = vpop.eup %702 }
 0x76f   :  { %v324_v53 = vmul.f32 %v703_v52, %v322_v51  ;;  %vm329_vm13 = vweird.f32 %v703_v52 }
 0x770   :  { %vm330_vm15 = vmor %vm328_vm14, %vm329_vm13 }
 0x771   :  { %v325_v54 = vsub.f32 1.0, %v324_v53 }
 0x773   :  { %v326_v55 = vmul.f32 %v703_v52, %v325_v54 }
 0x775   :  { %v327_v56 = vadd.f32 %v703_v52, %v326_v55 }
 0x777   :  { %v331_v59 = vsel %vm330_vm15, %v703_v52, %v327_v56 }
 0x778   :  { %v336_v62 = vsel %vm333_vm1, %v335_v60, %v331_v59 }
 0x779   :  { %v339_v0 = vmul.f32 %v336_v62, %v285_v35 }
 0x7d6   :  { %v342_v61 = vpop.permute.xlu0 %341 }
 0x7d7   :  { %v344_v63 = vmul.f32 %v342_v61, %v336_v62 }
 0x7d9   :  { %346 = vrot.lane.b32.xlu1 %v344_v63, %s765_s9 }
 0x84b   :  { %v347_v1 = vpop.permute.xlu1 %346 }
 0x84c   :  { %v349_v2 = vadd.f32 %v347_v1, %v339_v0  ;;  %v95_v1 = vadd.f32 %v858_v13, %v909_v12 }
 0x84e   :  { %704 = vtanh.f32 %v349_v2 }
 0x854   :  { %v705_v3 = vpop.eup %704 }
 0x855   :  { %352 = vrot.lane.b32.xlu2 %v705_v3, %s765_s9 }
 0x8af   :  { %v353_v4 = vpop.permute.xlu2 %352 }
 0x8b0   :  { %v355_v5 = vmul.f32 %v353_v4, %v336_v62 }
 0x8b2   :  { %v356_v10 = vmax.f32 %v922_v43, %v355_v5  ;;  %358 = vrot.lane.b32.xlu0 %v355_v5, %s766_s11 }
 0x924   :  { %v359_v6 = vpop.permute.xlu0 %358 }
 0x925   :  { %649 = vmatmul.msk.f32.vlgmr.msra.gmra.mxu2 %vm34_vm0, %v359_v6 }
 0x9a8   :  { %v379_v9 = vpop.f32.mrf.mxu2 }
 0x9a9   :  { %v382_v14 = vadd.f32 %v379_v9, %v89_v7 }
 0x9ab   :  { %706 = vtanh.f32 %v382_v14  ;;  %v650_v16 = vmul.f32 -1.442695, %v382_v14 }
 0x9ad   :  { %708 = vpow2.f32 %v650_v16 }
 0x9b1   :  { %v707_v15 = vpop.eup %706 }
 0x9b2   :  { %405 = vrot.lane.b32.xlu1 %v707_v15, %s765_s9 }
 0x9b3   :  { %v709_v17 = vpop.eup %708 }
 0x9b4   :  { %v386_v18 = vadd.f32 1.0, %v709_v17 }
 0x9b6   :  { %710 = vrcp.f32 %v386_v18  ;;  %v398_v24 = vand.u32 2147483648, %v386_v18  ;;  %vm392_vm3 = vweird.f32 %v386_v18  ;;  %v396_v11 = vand.u32 2147483647, %v386_v18 }
 0x9b8   :  { %v399_v26 = vor.u32 1.1754944e-38, %v398_v24  ;;  %vm397_vm5 = vcmp.eq.f32.partialorder %v396_v11, 8.507059e+37 }
 0x9bc   :  { %v711_v19 = vpop.eup %710 }
 0x9bd   :  { %v388_v20 = vmul.f32 %v711_v19, %v386_v18  ;;  %vm393_vm2 = vweird.f32 %v711_v19 }
 0x9be   :  { %vm394_vm4 = vmor %vm392_vm3, %vm393_vm2 }
 0x9bf   :  { %v389_v21 = vsub.f32 1.0, %v388_v20 }
 0x9c1   :  { %v390_v22 = vmul.f32 %v711_v19, %v389_v21 }
 0x9c3   :  { %v391_v23 = vadd.f32 %v711_v19, %v390_v22 }
 0x9c5   :  { %v395_v25 = vsel %vm394_vm4, %v711_v19, %v391_v23 }
 0x9c6   :  { %v400_v28 = vsel %vm397_vm5, %v399_v26, %v395_v25 }
 0x9c7   :  { %v403_v30 = vmul.f32 %v400_v28, %v349_v2 }
 0xa24   :  { %v406_v27 = vpop.permute.xlu1 %405 }
 0xa25   :  { %v408_v29 = vmul.f32 %v406_v27, %v400_v28 }
 0xa27   :  { %410 = vrot.lane.b32.xlu2 %v408_v29, %s765_s9 }
 0xa81   :  { %v411_v31 = vpop.permute.xlu2 %410 }
 0xa82   :  { %v413_v32 = vadd.f32 %v411_v31, %v403_v30  ;;  %v98_v30 = vadd.f32 %v858_v13, %v911_v8 }
 0xa84   :  { %712 = vtanh.f32 %v413_v32 }
 0xa8a   :  { %v713_v33 = vpop.eup %712 }
 0xa8b   :  { %416 = vrot.lane.b32.xlu0 %v713_v33, %s765_s9 }
 0xafd   :  { %v417_v34 = vpop.permute.xlu0 %416 }
 0xafe   :  { %v419_v35 = vmul.f32 %v417_v34, %v400_v28 }
 0xb00   :  { %v938_v36 = vmax.f32 %v356_v10, %v419_v35  ;;  %422 = vrot.lane.b32.xlu1 %v419_v35, %s766_s11 }
 0xb72   :  { %v423_v37 = vpop.permute.xlu1 %422 }
 0xb73   :  { %651 = vmatmul.msk.f32.vlgmr.msra.gmra.mxu3 %vm34_vm0, %v423_v37 }
 0xbf6   :  { %v443_v40 = vpop.f32.mrf.mxu3 }
 0xbf7   :  { %v446_v41 = vadd.f32 %v443_v40, %v92_v38 }
 0xbf9   :  { %714 = vtanh.f32 %v446_v41  ;;  %v652_v44 = vmul.f32 -1.442695, %v446_v41 }
 0xbfb   :  { %716 = vpow2.f32 %v652_v44 }
 0xbff   :  { %v715_v43 = vpop.eup %714 }
 0xc00   :  { %469 = vrot.lane.b32.xlu2 %v715_v43, %s765_s9 }
 0xc01   :  { %v717_v45 = vpop.eup %716 }
 0xc02   :  { %v450_v46 = vadd.f32 1.0, %v717_v45 }
 0xc04   :  { %718 = vrcp.f32 %v450_v46  ;;  %v462_v51 = vand.u32 2147483648, %v450_v46  ;;  %vm456_vm7 = vweird.f32 %v450_v46  ;;  %v460_v42 = vand.u32 2147483647, %v450_v46 }
 0xc06   :  { %v463_v53 = vor.u32 1.1754944e-38, %v462_v51  ;;  %vm461_vm9 = vcmp.eq.f32.partialorder %v460_v42, 8.507059e+37 }
 0xc0a   :  { %v719_v47 = vpop.eup %718 }
 0xc0b   :  { %v452_v48 = vmul.f32 %v719_v47, %v450_v46  ;;  %vm457_vm6 = vweird.f32 %v719_v47 }
 0xc0c   :  { %vm458_vm8 = vmor %vm456_vm7, %vm457_vm6 }
 0xc0d   :  { %v453_v49 = vsub.f32 1.0, %v452_v48 }
 0xc0f   :  { %v454_v50 = vmul.f32 %v719_v47, %v453_v49 }
 0xc11   :  { %v455_v39 = vadd.f32 %v719_v47, %v454_v50 }
 0xc13   :  { %v459_v52 = vsel %vm458_vm8, %v719_v47, %v455_v39 }
 0xc14   :  { %v464_v55 = vsel %vm461_vm9, %v463_v53, %v459_v52 }
 0xc15   :  { %v467_v57 = vmul.f32 %v464_v55, %v413_v32 }
 0xc5a   :  { %v470_v54 = vpop.permute.xlu2 %469 }
 0xc5b   :  { %v472_v56 = vmul.f32 %v470_v54, %v464_v55 }
 0xc5d   :  { %474 = vrot.lane.b32.xlu0 %v472_v56, %s765_s9 }
 0xccf   :  { %v475_v58 = vpop.permute.xlu0 %474 }
 0xcd0   :  { %v477_v59 = vadd.f32 %v475_v58, %v467_v57 }
 0xcd2   :  { %720 = vtanh.f32 %v477_v59 }
 0xcd8   :  { %v721_v60 = vpop.eup %720 }
 0xcd9   :  { %480 = vrot.lane.b32.xlu1 %v721_v60, %s765_s9 }
 0xd4b   :  { %v481_v61 = vpop.permute.xlu1 %480 }
 0xd4c   :  { %v483_v62 = vmul.f32 %v481_v61, %v464_v55 }
 0xd4e   :  { %v484_v63 = vmax.f32 %v938_v36, %v483_v62  ;;  %486 = vrot.lane.b32.xlu2 %v483_v62, %s766_s11 }
 0xda8   :  { %v487_v0 = vpop.permute.xlu2 %486 }
 0xda9   :  { %653 = vmatmul.msk.f32.vlgmr.msrb.gmra.mxu1 %vm34_vm0, %v487_v0 }
 0xe26   :  { %v507_v2 = vpop.f32.mrf.mxu1 }
 0xe27   :  { %v510_v3 = vadd.f32 %v507_v2, %v95_v1 }
 0xe29   :  { %722 = vtanh.f32 %v510_v3  ;;  %v654_v5 = vmul.f32 -1.442695, %v510_v3 }
 0xe2b   :  { %724 = vpow2.f32 %v654_v5 }
 0xe2f   :  { %v723_v4 = vpop.eup %722 }
 0xe30   :  { %533 = vrot.lane.b32.xlu0 %v723_v4, %s765_s9 }
 0xe31   :  { %v725_v10 = vpop.eup %724 }
 0xe32   :  { %v514_v6 = vadd.f32 1.0, %v725_v10 }
 0xe34   :  { %726 = vrcp.f32 %v514_v6  ;;  %v526_v17 = vand.u32 2147483648, %v514_v6  ;;  %vm520_vm11 = vweird.f32 %v514_v6  ;;  %v524_v12 = vand.u32 2147483647, %v514_v6 }
 0xe36   :  { %v527_v19 = vor.u32 1.1754944e-38, %v526_v17  ;;  %vm525_vm13 = vcmp.eq.f32.partialorder %v524_v12, 8.507059e+37 }
 0xe3a   :  { %v727_v7 = vpop.eup %726 }
 0xe3b   :  { %v516_v9 = vmul.f32 %v727_v7, %v514_v6  ;;  %vm521_vm10 = vweird.f32 %v727_v7 }
 0xe3c   :  { %vm522_vm12 = vmor %vm520_vm11, %vm521_vm10 }
 0xe3d   :  { %v517_v14 = vsub.f32 1.0, %v516_v9 }
 0xe3f   :  { %v518_v15 = vmul.f32 %v727_v7, %v517_v14 }
 0xe41   :  { %v519_v16 = vadd.f32 %v727_v7, %v518_v15 }
 0xe43   :  { %v523_v18 = vsel %vm522_vm12, %v727_v7, %v519_v16 }
 0xe44   :  { %v528_v21 = vsel %vm525_vm13, %v527_v19, %v523_v18 }
 0xe45   :  { %v531_v23 = vmul.f32 %v528_v21, %v477_v59 }
 0xea2   :  { %v534_v20 = vpop.permute.xlu0 %533 }
 0xea3   :  { %v536_v22 = vmul.f32 %v534_v20, %v528_v21 }
 0xea5   :  { %538 = vrot.lane.b32.xlu1 %v536_v22, %s765_s9 }
 0xf17   :  { %v539_v24 = vpop.permute.xlu1 %538 }
 0xf18   :  { %v541_v11 = vadd.f32 %v539_v24, %v531_v23 }
 0xf1a   :  { %728 = vtanh.f32 %v541_v11 }
 0xf20   :  { %v729_v25 = vpop.eup %728 }
 0xf21   :  { %544 = vrot.lane.b32.xlu2 %v729_v25, %s765_s9 }
 0xf7b   :  { %v545_v26 = vpop.permute.xlu2 %544 }
 0xf7c   :  { %v547_v27 = vmul.f32 %v545_v26, %v528_v21 }
 0xf7e   :  { %v548_v28 = vmax.f32 %v484_v63, %v547_v27  ;;  %550 = vrot.lane.b32.xlu0 %v547_v27, %s766_s11 }
 0xff0   :  { %v551_v29 = vpop.permute.xlu0 %550 }
 0xff1   :  { %655 = vmatmul.msk.f32.vlgmr.msrb.gmra.mxu2 %vm34_vm0, %v551_v29 }
0x1074   :  { %v571_v31 = vpop.f32.mrf.mxu2 }
0x1075   :  { %v574_v32 = vadd.f32 %v571_v31, %v98_v30 }
0x1077   :  { %730 = vtanh.f32 %v574_v32  ;;  %v656_v34 = vmul.f32 -1.442695, %v574_v32 }
0x1079   :  { %732 = vpow2.f32 %v656_v34 }
0x107d   :  { %v731_v33 = vpop.eup %730 }
0x107e   :  { %597 = vrot.lane.b32.xlu1 %v731_v33, %s765_s9 }
0x107f   :  { %v733_v35 = vpop.eup %732 }
0x1080   :  { %v578_v36 = vadd.f32 1.0, %v733_v35 }
0x1082   :  { %734 = vrcp.f32 %v578_v36  ;;  %v590_v44 = vand.u32 2147483648, %v578_v36  ;;  %vm584_vm15 = vweird.f32 %v578_v36  ;;  %v588_v13 = vand.u32 2147483647, %v578_v36 }
0x1084   :  { %v591_v45 = vor.u32 1.1754944e-38, %v590_v44  ;;  %vm589_vm2 = vcmp.eq.f32.partialorder %v588_v13, 8.507059e+37 }
0x1088   :  { %v735_v37 = vpop.eup %734 }
0x1089   :  { %v580_v38 = vmul.f32 %v735_v37, %v578_v36  ;;  %vm585_vm14 = vweird.f32 %v735_v37 }
0x108a   :  { %vm586_vm1 = vmor %vm584_vm15, %vm585_vm14 }
0x108b   :  { %v581_v40 = vsub.f32 1.0, %v580_v38 }
0x108d   :  { %v582_v41 = vmul.f32 %v735_v37, %v581_v40 }
0x108f   :  { %v583_v43 = vadd.f32 %v735_v37, %v582_v41 }
0x1091   :  { %v587_v8 = vsel %vm586_vm1, %v735_v37, %v583_v43 }
0x1092   :  { %v592_v47 = vsel %vm589_vm2, %v591_v45, %v587_v8 }
0x1093   :  { %v595_v49 = vmul.f32 %v592_v47, %v541_v11 }
0x10f0   :  { %v598_v46 = vpop.permute.xlu1 %597 }
0x10f1   :  { %v600_v48 = vmul.f32 %v598_v46, %v592_v47 }
0x10f3   :  { %602 = vrot.lane.b32.xlu2 %v600_v48, %s765_s9 }
0x114d   :  { %v603_v50 = vpop.permute.xlu2 %602 }
0x114e   :  { %v605_v39 = vadd.f32 %v603_v50, %v595_v49 }
0x1150   :  { %736 = vtanh.f32 %v605_v39 }
0x1156   :  { %v737_v51 = vpop.eup %736 }
0x1157   :  { %608 = vrot.lane.b32.xlu0 %v737_v51, %s765_s9 }
0x11c9   :  { %v609_v42 = vpop.permute.xlu0 %608 }
0x11ca   :  { %v611_v52 = vmul.f32 %v609_v42, %v592_v47 }
0x11cc   :  { %v612_v53 = vmax.f32 %v548_v28, %v611_v52 }
0x11ce   :  { %614 = vrot.lane.b32.xlu1 %v612_v53, %s766_s11 }
0x1240   :  { %v615_v54 = vpop.permute.xlu1 %614 }
0x1241   :  { %617 = vst.msk [vmem:[#allocation2] sm:$0xff] %vm34_vm0, %v615_v54 }
0x1242   :  { %628 = dma.vmem_to_hbm [thread:$0]  %s624_s22, 128, %s626_s25, [#allocation3]  }
0x1243   :  { %762 = dma.done.wait [#allocation3], 128  }
0x1244   :  { %763 = vsyncadd [#allocation3], 4294967168 }
0x1245   :  { %633 = vsyncpa [#allocation3], 1 }

</bundles_post_ra>
